<compile_context>
chip_gen: v7x
topology: tpu7x:2x2x1
jax: 0.10.0
libtpu: 0.0.40
codegen_flags: <defaults>
</compile_context>

<pallas_src>
import functools

import jax
import jax.numpy as jnp
import numpy as np
from jax import lax
from jax.experimental import pallas as pl
from jax.experimental.pallas import tpu as pltpu


# --------------------------------------------------------------------------- #
# Kernel
# --------------------------------------------------------------------------- #
def _prior_r_seq_kernel(layout, s_dim, z_dim, min_stddev, compute_dtype,
                        # inputs
                        x_ref, z0_ref, p_ref,
                        # outputs
                        out_ref,
                        # scratch
                        z_state):
    f32 = jnp.float32
    t = pl.program_id(0)

    def wseg(name):
        off, k, n = layout[name]           # static python ints -> free slices
        return p_ref[off:off + k, :n]

    def bseg(name):
        off, k, n = layout[name]           # biases pre-broadcast to B rows
        return p_ref[off:off + k, :n].astype(f32)

    # Recurrent GRU state lives in VMEM across the whole time grid.
    @pl.when(t == 0)
    def _():
        z_state[...] = z0_ref[...].astype(f32)

    x = x_ref[...].astype(compute_dtype)   # (B, s_dim + v_dim + a_dim)
    z_prev = z_state[...]                  # (B, z_dim) f32

    # fc1(cat([s_prev, v])) + ReLU  (concat done in the wrapper)
    h = jnp.dot(x, wseg("w1"), preferred_element_type=f32) + bseg("b1")
    h = jnp.maximum(h, 0.0)

    # GRUCell(h, z_prev): two fused dots (N = 3*z_dim), PyTorch gate order
    # (r, u, n).  r/u biases are pre-summed into b_g; b_hn stays inside r*().
    gi = jnp.dot(h.astype(compute_dtype), wseg("wih"),
                 preferred_element_type=f32) + bseg("b_g")
    gh = jnp.dot(z_prev.astype(compute_dtype), wseg("whh"),
                 preferred_element_type=f32)
    g_ru = jax.nn.sigmoid(gi[:, :2 * z_dim] + gh[:, :2 * z_dim])
    r = g_ru[:, :z_dim]
    u = g_ru[:, z_dim:]
    i_n = gi[:, 2 * z_dim:]
    h_n = gh[:, 2 * z_dim:] + bseg("b_hn")
    n = jnp.tanh(i_n + r * h_n)
    z_new = (1.0 - u) * n + u * z_prev

    # fc2 + ReLU
    h2 = jnp.dot(z_new.astype(compute_dtype), wseg("w2"),
                 preferred_element_type=f32) + bseg("b2")
    h2 = jnp.maximum(h2, 0.0)

    # Fused heads: one (2z, 2s) dot -> [loc | raw_scale]; stable softplus on
    # the scale half selected with a lane mask (pure VPU/EUP, no lane slice).
    # NOTE: min_stddev is masked out of the loc half by the where -- benign.
    head = jnp.dot(h2.astype(compute_dtype), wseg("w3"),
                   preferred_element_type=f32) + bseg("b3")
    softp = (jnp.maximum(head, 0.0)
             + jnp.log1p(jnp.exp(-jnp.abs(head)))
             + min_stddev)
    lane = lax.broadcasted_iota(jnp.int32, head.shape, 1)
    locscale = jnp.where(lane >= s_dim, softp, head)       # (B, 2*s_dim)

    # Carry state, emit one lane-contiguous [loc | scale | z] tile per step.
    z_state[...] = z_new
    out_ref[...] = jnp.concatenate([locscale, z_new], axis=1).astype(out_ref.dtype)


# --------------------------------------------------------------------------- #
# Parameter packing: one contiguous (R, C) buffer, DMA'd to VMEM once.
# --------------------------------------------------------------------------- #
def pack_prior_r_params(params, s_dim, z_dim, batch, dtype=jnp.float32):
    """Pack every weight/bias into one (R, C) buffer plus a static layout dict
    name -> (row_offset, rows, cols).  Segments are padded to 8-row multiples
    (sublane-tile aligned slices); GRU gate weights stay fused (3*z_dim wide);
    r/u biases are pre-summed; biases are pre-broadcast to `batch` rows so the
    kernel never emits a (1,n)->(B,n) broadcast."""
    z = z_dim

    def gate(a, g):
        return a[:, g * z:(g + 1) * z]

    bih, bhh = params["bih"], params["bhh"]
    b_g = jnp.concatenate([gate(bih, 0) + gate(bhh, 0),
                           gate(bih, 1) + gate(bhh, 1),
                           gate(bih, 2)], axis=1)                 # (1, 3z)

    segs = [
        # weights (in_features, out_features)
        ("w1",  params["w1"]),                                    # (in1, 2s)
        ("wih", params["wih"]),                                   # (2s, 3z)
        ("whh", params["whh"]),                                   # (z, 3z)
        ("w2",  params["w2"]),                                    # (z, 2z)
        ("w3",  jnp.concatenate([params["w31"], params["w32"]], axis=1)),  # (2z, 2s)
        # biases, pre-broadcast to `batch` rows
        ("b1",   jnp.broadcast_to(params["b1"], (batch, 2 * s_dim))),
        ("b_g",  jnp.broadcast_to(b_g, (batch, 3 * z))),
        ("b_hn", jnp.broadcast_to(gate(bhh, 2), (batch, z))),
        ("b2",   jnp.broadcast_to(params["b2"], (batch, 2 * z))),
        ("b3",   jnp.broadcast_to(
            jnp.concatenate([params["b31"], params["b32"]], axis=1),
            (batch, 2 * s_dim))),
    ]

    C = max(int(a.shape[1]) for _, a in segs)
    layout = {}
    rows = []
    off = 0
    for name, a in segs:
        a = jnp.asarray(a, jnp.float32)
        k, ncol = int(a.shape[0]), int(a.shape[1])
        kp = k + ((-k) % 8)                       # sublane-tile aligned
        a = jnp.pad(a, ((0, kp - k), (0, C - ncol)))
        layout[name] = (off, k, ncol)
        rows.append(a)
        off += kp
    packed = jnp.concatenate(rows, axis=0).astype(dtype)
    return packed, layout


# --------------------------------------------------------------------------- #
# Wrappers
# --------------------------------------------------------------------------- #
def prior_r_forward_seq(packed, layout, x_seq, z0, s_dim, z_dim, min_stddev=0.0):
    """Fused recurrence over T steps.  x_seq: (T, B, s_dim + v_dim + a_dim),
    z0: (B, z_dim).  Returns loc (T,B,s), scale (T,B,s), z_seq (T,B,z)."""
    T, B, in1 = x_seq.shape
    out_cols = 2 * s_dim + z_dim

    kernel = functools.partial(_prior_r_seq_kernel, layout, s_dim, z_dim,
                               float(min_stddev), packed.dtype)

    out = pl.pallas_call(
        kernel,
        grid=(T,),
        in_specs=[
            # per-step input streamed; leading time dim squeezed out
            pl.BlockSpec((None, B, in1), lambda t: (t, 0, 0)),
            # initial state: resident (same block every t), read only at t==0
            pl.BlockSpec((B, z_dim), lambda t: (0, 0)),
            # packed params: DMA'd once, VMEM-resident for the whole grid
            pl.BlockSpec(packed.shape, lambda t: (0, 0)),
        ],
        out_specs=pl.BlockSpec((None, B, out_cols), lambda t: (t, 0, 0)),
        out_shape=jax.ShapeDtypeStruct((T, B, out_cols), jnp.float32),
        scratch_shapes=[pltpu.VMEM((B, z_dim), jnp.float32)],   # carried z
        compiler_params=pltpu.CompilerParams(
            dimension_semantics=("arbitrary",)),
    )(x_seq, z0, packed)

    loc = out[..., :s_dim]
    scale = out[..., s_dim:2 * s_dim]
    z_seq = out[..., 2 * s_dim:]
    return loc, scale, z_seq


def prior_r_forward(packed, layout, s_prev, z_prev, v, min_stddev=0.0):
    """Single-step module forward (T == 1 case of the fused kernel)."""
    s_dim = s_prev.shape[1]
    z_dim = z_prev.shape[1]
    x = jnp.concatenate([s_prev, v], axis=1)[None]          # (1, B, in1)
    loc, scale, z_seq = prior_r_forward_seq(packed, layout, x, z_prev,
                                            s_dim, z_dim, min_stddev)
    return loc[0], scale[0], z_seq[0]


# --------------------------------------------------------------------------- #
# Init + pure-JAX reference (mirrors the PyTorch module)
# --------------------------------------------------------------------------- #
def init_params(key, s_dim, z_dim, v_dim, a_dim):
    """PyTorch-style uniform(-1/sqrt(fan_in), +) init.  Weights stored
    transposed vs. PyTorch: (in_features, out_features)."""
    ks = jax.random.split(key, 16)
    f32 = jnp.float32

    def lin(kw, kb, fan_in, fan_out):
        bound = 1.0 / np.sqrt(fan_in)
        w = jax.random.uniform(kw, (fan_in, fan_out), f32, -bound, bound)
        b = jax.random.uniform(kb, (1, fan_out), f32, -bound, bound)
        return w, b

    in1 = s_dim + v_dim + a_dim
    w1, b1 = lin(ks[0], ks[1], in1, 2 * s_dim)
    gb = 1.0 / np.sqrt(z_dim)          # GRUCell bound uses hidden_size
    wih = jax.random.uniform(ks[2], (2 * s_dim, 3 * z_dim), f32, -gb, gb)
    whh = jax.random.uniform(ks[3], (z_dim, 3 * z_dim), f32, -gb, gb)
    bih = jax.random.uniform(ks[4], (1, 3 * z_dim), f32, -gb, gb)
    bhh = jax.random.uniform(ks[5], (1, 3 * z_dim), f32, -gb, gb)
    w2, b2 = lin(ks[6], ks[7], z_dim, 2 * z_dim)
    w31, b31 = lin(ks[8], ks[9], 2 * z_dim, s_dim)
    w32, b32 = lin(ks[10], ks[11], 2 * z_dim, s_dim)

    return {"w1": w1, "b1": b1, "wih": wih, "whh": whh, "bih": bih, "bhh": bhh,
            "w2": w2, "b2": b2, "w31": w31, "b31": b31, "w32": w32, "b32": b32}


def prior_r_reference(params, s_prev, z_prev, v, min_stddev=0.0):
    z_dim = z_prev.shape[1]
    h = jnp.concatenate([s_prev, v], axis=1)
    h = jax.nn.relu(h @ params["w1"] + params["b1"])
    gi = h @ params["wih"] + params["bih"]
    gh = z_prev @ params["whh"] + params["bhh"]
    r = jax.nn.sigmoid(gi[:, :z_dim] + gh[:, :z_dim])
    u = jax.nn.sigmoid(gi[:, z_dim:2 * z_dim] + gh[:, z_dim:2 * z_dim])
    n = jnp.tanh(gi[:, 2 * z_dim:] + r * gh[:, 2 * z_dim:])
    z = (1.0 - u) * n + u * z_prev
    h2 = jax.nn.relu(z @ params["w2"] + params["b2"])
    loc = h2 @ params["w31"] + params["b31"]
    scale = jax.nn.softplus(h2 @ params["w32"] + params["b32"]) + min_stddev
    return loc, scale, z


def prior_r_reference_seq(params, s_seq, v_seq, z0, min_stddev=0.0):
    locs, scales, zs = [], [], []
    z = z0
    for t in range(s_seq.shape[0]):
        loc, scale, z = prior_r_reference(params, s_seq[t], z, v_seq[t], min_stddev)
        locs.append(loc); scales.append(scale); zs.append(z)
    return jnp.stack(locs), jnp.stack(scales), jnp.stack(zs)


# --------------------------------------------------------------------------- #
# Test
# --------------------------------------------------------------------------- #
if __name__ == "__main__":
    B, s_dim, z_dim, v_dim, a_dim = 8, 16, 32, 8, 0
    T = 12
    min_stddev = 0.01

    key = jax.random.PRNGKey(0)
    kp, ks, kz, kv = jax.random.split(key, 4)
    params = init_params(kp, s_dim, z_dim, v_dim, a_dim)
    s_seq = jax.random.normal(ks, (T, B, s_dim), jnp.float32)
    v_seq = jax.random.normal(kv, (T, B, v_dim + a_dim), jnp.float32)
    z0 = jax.random.normal(kz, (B, z_dim), jnp.float32)

    # Reference (unrolled, threads z through T steps).
    loc_r, scale_r, z_r = prior_r_reference_seq(params, s_seq, v_seq, z0, min_stddev)

    # ---- f32 packed params: fused T-step recurrence, one kernel launch ----
    packed_f32, layout = pack_prior_r_params(params, s_dim, z_dim, batch=B,
                                             dtype=jnp.float32)
    x_seq = jnp.concatenate([s_seq, v_seq], axis=-1)
    loc, scale, z_seq = prior_r_forward_seq(packed_f32, layout, x_seq, z0,
                                            s_dim, z_dim, min_stddev)
    jax.block_until_ready((loc, scale, z_seq))
    np.testing.assert_allclose(np.asarray(loc), np.asarray(loc_r), rtol=1e-4, atol=1e-4)
    np.testing.assert_allclose(np.asarray(scale), np.asarray(scale_r), rtol=1e-4, atol=1e-4)
    np.testing.assert_allclose(np.asarray(z_seq), np.asarray(z_r), rtol=1e-4, atol=1e-4)

    # ---- single-step module forward parity (T == 1 case) ----
    loc1, scale1, z1 = prior_r_forward(packed_f32, layout, s_seq[0], z0, v_seq[0],
                                       min_stddev)
    jax.block_until_ready((loc1, scale1, z1))
    loc1_r, scale1_r, z1_r = prior_r_reference(params, s_seq[0], z0, v_seq[0],
                                               min_stddev)
    np.testing.assert_allclose(np.asarray(loc1), np.asarray(loc1_r), rtol=1e-4, atol=1e-4)
    np.testing.assert_allclose(np.asarray(scale1), np.asarray(scale1_r), rtol=1e-4, atol=1e-4)
    np.testing.assert_allclose(np.asarray(z1), np.asarray(z1_r), rtol=1e-4, atol=1e-4)

    # ---- bf16 packed weights (v6e/v7x option): bf16 only on dot operands,
    #      all gate / transcendental math stays f32; loose tolerance vs f32 ref.
    packed_bf16, layout_b = pack_prior_r_params(params, s_dim, z_dim, batch=B,
                                                dtype=jnp.bfloat16)
    loc_b, scale_b, z_b = prior_r_forward_seq(packed_bf16, layout_b, x_seq, z0,
                                              s_dim, z_dim, min_stddev)
    jax.block_until_ready((loc_b, scale_b, z_b))
    np.testing.assert_allclose(np.asarray(loc_b), np.asarray(loc_r), rtol=5e-2, atol=5e-2)
    np.testing.assert_allclose(np.asarray(scale_b), np.asarray(scale_r), rtol=5e-2, atol=5e-2)
    np.testing.assert_allclose(np.asarray(z_b), np.asarray(z_r), rtol=5e-2, atol=5e-2)

    print("KERNEL_OK")
</pallas_src>

<mosaic_0001>
module attributes {stable_mosaic.version = 11 : i64} {
  func.func @_prior_r_seq_kernel(%arg0: i32, %arg1: memref<1x8x24xf32, #tpu.memory_space<vmem>>, %arg2: memref<8x32xf32, #tpu.memory_space<vmem>>, %arg3: memref<224x96xf32, #tpu.memory_space<vmem>>, %arg4: memref<1x8x64xf32, #tpu.memory_space<vmem>>, %arg5: memref<8x32xf32, #tpu.memory_space<vmem>>) attributes {dimension_semantics = [#tpu.dimension_semantics<arbitrary>], iteration_bounds = array<i64: 12>, scalar_prefetch = 0 : i64, scratch_operands = 1 : i64, tpu.core_type = #tpu.core_type<tc>, window_params = [{transform_indices = @transform_0, window_bounds = array<i64: 1, 8, 24>}, {pipeline_mode = #tpu.pipeline_mode<synchronous>, transform_indices = @transform_1, window_bounds = array<i64: 8, 32>}, {pipeline_mode = #tpu.pipeline_mode<synchronous>, transform_indices = @transform_2, window_bounds = array<i64: 224, 96>}, {transform_indices = @transform_3, window_bounds = array<i64: 1, 8, 64>}]} {
    %c0_i32 = arith.constant 0 : i32
    %0 = arith.cmpi eq, %arg0, %c0_i32 : i32
    %1 = arith.extui %0 : i1 to i32
    %c0_i32_0 = arith.constant 0 : i32
    %2 = arith.cmpi ne, %1, %c0_i32_0 : i32
    scf.if %2 {
      %c0_32 = arith.constant 0 : index
      %c0_33 = arith.constant 0 : index
      %69 = vector.load %arg2[%c0_32, %c0_33] : memref<8x32xf32, #tpu.memory_space<vmem>>, vector<8x32xf32>
      %c0_34 = arith.constant 0 : index
      %c0_35 = arith.constant 0 : index
      %70 = vector.load %arg5[%c0_34, %c0_35] : memref<8x32xf32, #tpu.memory_space<vmem>>, vector<8x32xf32>
      tpu.vector_store %arg5[%c0_34, %c0_35], %69 {strides = array<i32>} : memref<8x32xf32, #tpu.memory_space<vmem>>, vector<8x32xf32>,
    } else {
    }
    %c0 = arith.constant 0 : index
    %c0_1 = arith.constant 0 : index
    %c0_2 = arith.constant 0 : index
    %3 = vector.load %arg1[%c0, %c0_1, %c0_2] : memref<1x8x24xf32, #tpu.memory_space<vmem>>, vector<1x8x24xf32>
    %4 = vector.shape_cast %3 : vector<1x8x24xf32> to vector<8x24xf32>
    %c0_3 = arith.constant 0 : index
    %c0_4 = arith.constant 0 : index
    %5 = vector.load %arg5[%c0_3, %c0_4] : memref<8x32xf32, #tpu.memory_space<vmem>>, vector<8x32xf32>
    %c0_5 = arith.constant 0 : index
    %c0_6 = arith.constant 0 : index
    %6 = vector.load %arg3[%c0_5, %c0_6] : memref<224x96xf32, #tpu.memory_space<vmem>>, vector<24x32xf32>
    %cst = arith.constant dense<0.000000e+00> : vector<8x32xf32>
    %7 = tpu.matmul %4, %6, %cst {dimension_numbers = #tpu.dot_dimension_numbers<[1], [0], [0], [1], [0, 0, 1, 1], [], []>} : vector<8x24xf32>, vector<24x32xf32>, vector<8x32xf32> -> vector<8x32xf32>
    %c184 = arith.constant 184 : index
    %c0_7 = arith.constant 0 : index
    %8 = vector.load %arg3[%c184, %c0_7] : memref<224x96xf32, #tpu.memory_space<vmem>>, vector<8x32xf32>
    %9 = arith.addf %7, %8 : vector<8x32xf32>
    %cst_8 = arith.constant 0.000000e+00 : f32
    %10 = vector.broadcast %cst_8 : f32 to vector<8x32xf32>
    %11 = arith.maximumf %9, %10 : vector<8x32xf32>
    %c24 = arith.constant 24 : index
    %c0_9 = arith.constant 0 : index
    %12 = vector.load %arg3[%c24, %c0_9] : memref<224x96xf32, #tpu.memory_space<vmem>>, vector<32x96xf32>
    %cst_10 = arith.constant dense<0.000000e+00> : vector<8x96xf32>
    %13 = tpu.matmul %11, %12, %cst_10 {dimension_numbers = #tpu.dot_dimension_numbers<[1], [0], [0], [1], [0, 0, 1, 1], [], []>} : vector<8x32xf32>, vector<32x96xf32>, vector<8x96xf32> -> vector<8x96xf32>
    %c192 = arith.constant 192 : index
    %c0_11 = arith.constant 0 : index
    %14 = vector.load %arg3[%c192, %c0_11] : memref<224x96xf32, #tpu.memory_space<vmem>>, vector<8x96xf32>
    %15 = arith.addf %13, %14 : vector<8x96xf32>
    %c56 = arith.constant 56 : index
    %c0_12 = arith.constant 0 : index
    %16 = vector.load %arg3[%c56, %c0_12] : memref<224x96xf32, #tpu.memory_space<vmem>>, vector<32x96xf32>
    %cst_13 = arith.constant dense<0.000000e+00> : vector<8x96xf32>
    %17 = tpu.matmul %5, %16, %cst_13 {dimension_numbers = #tpu.dot_dimension_numbers<[1], [0], [0], [1], [0, 0, 1, 1], [], []>} : vector<8x32xf32>, vector<32x96xf32>, vector<8x96xf32> -> vector<8x96xf32>
    %18 = vector.extract_strided_slice %15 {offsets = [0, 0], sizes = [8, 64], strides = [1, 1]} : vector<8x96xf32> to vector<8x64xf32>
    %19 = vector.extract_strided_slice %17 {offsets = [0, 0], sizes = [8, 64], strides = [1, 1]} : vector<8x96xf32> to vector<8x64xf32>
    %20 = arith.addf %18, %19 : vector<8x64xf32>
    %21 = arith.negf %20 : vector<8x64xf32>
    %22 = math.exp %21 : vector<8x64xf32>
    %cst_14 = arith.constant 1.000000e+00 : f32
    %23 = vector.broadcast %cst_14 : f32 to vector<8x64xf32>
    %24 = arith.addf %23, %22 : vector<8x64xf32>
    %25 = arith.divf %23, %24 : vector<8x64xf32>
    %26 = vector.extract_strided_slice %25 {offsets = [0, 0], sizes = [8, 32], strides = [1, 1]} : vector<8x64xf32> to vector<8x32xf32>
    %27 = vector.extract_strided_slice %25 {offsets = [0, 32], sizes = [8, 32], strides = [1, 1]} : vector<8x64xf32> to vector<8x32xf32>
    %28 = vector.extract_strided_slice %15 {offsets = [0, 64], sizes = [8, 32], strides = [1, 1]} : vector<8x96xf32> to vector<8x32xf32>
    %29 = vector.extract_strided_slice %17 {offsets = [0, 64], sizes = [8, 32], strides = [1, 1]} : vector<8x96xf32> to vector<8x32xf32>
    %c200 = arith.constant 200 : index
    %c0_15 = arith.constant 0 : index
    %30 = vector.load %arg3[%c200, %c0_15] : memref<224x96xf32, #tpu.memory_space<vmem>>, vector<8x32xf32>
    %31 = arith.addf %29, %30 : vector<8x32xf32>
    %32 = arith.mulf %26, %31 : vector<8x32xf32>
    %33 = arith.addf %28, %32 : vector<8x32xf32>
    %34 = math.tanh %33 : vector<8x32xf32>
    %cst_16 = arith.constant 1.000000e+00 : f32
    %35 = vector.broadcast %cst_16 : f32 to vector<8x32xf32>
    %36 = arith.subf %35, %27 : vector<8x32xf32>
    %37 = arith.mulf %36, %34 : vector<8x32xf32>
    %38 = arith.mulf %27, %5 : vector<8x32xf32>
    %39 = arith.addf %37, %38 : vector<8x32xf32>
    %c88 = arith.constant 88 : index
    %c0_17 = arith.constant 0 : index
    %40 = vector.load %arg3[%c88, %c0_17] : memref<224x96xf32, #tpu.memory_space<vmem>>, vector<32x64xf32>
    %cst_18 = arith.constant dense<0.000000e+00> : vector<8x64xf32>
    %41 = tpu.matmul %39, %40, %cst_18 {dimension_numbers = #tpu.dot_dimension_numbers<[1], [0], [0], [1], [0, 0, 1, 1], [], []>} : vector<8x32xf32>, vector<32x64xf32>, vector<8x64xf32> -> vector<8x64xf32>
    %c208 = arith.constant 208 : index
    %c0_19 = arith.constant 0 : index
    %42 = vector.load %arg3[%c208, %c0_19] : memref<224x96xf32, #tpu.memory_space<vmem>>, vector<8x64xf32>
    %43 = arith.addf %41, %42 : vector<8x64xf32>
    %cst_20 = arith.constant 0.000000e+00 : f32
    %44 = vector.broadcast %cst_20 : f32 to vector<8x64xf32>
    %45 = arith.maximumf %43, %44 : vector<8x64xf32>
    %c120 = arith.constant 120 : index
    %c0_21 = arith.constant 0 : index
    %46 = vector.load %arg3[%c120, %c0_21] : memref<224x96xf32, #tpu.memory_space<vmem>>, vector<64x32xf32>
    %cst_22 = arith.constant dense<0.000000e+00> : vector<8x32xf32>
    %47 = tpu.matmul %45, %46, %cst_22 {dimension_numbers = #tpu.dot_dimension_numbers<[1], [0], [0], [1], [0, 0, 1, 1], [], []>} : vector<8x64xf32>, vector<64x32xf32>, vector<8x32xf32> -> vector<8x32xf32>
    %c216 = arith.constant 216 : index
    %c0_23 = arith.constant 0 : index
    %48 = vector.load %arg3[%c216, %c0_23] : memref<224x96xf32, #tpu.memory_space<vmem>>, vector<8x32xf32>
    %49 = arith.addf %47, %48 : vector<8x32xf32>
    %cst_24 = arith.constant 0.000000e+00 : f32
    %50 = vector.broadcast %cst_24 : f32 to vector<8x32xf32>
    %51 = arith.maximumf %49, %50 : vector<8x32xf32>
    %52 = math.absf %49 : vector<8x32xf32>
    %cst_25 = arith.constant 0.000000e+00 : f32
    %53 = vector.broadcast %cst_25 : f32 to vector<8x32xf32>
    %54 = arith.subf %53, %52 : vector<8x32xf32>
    %55 = math.exp %54 : vector<8x32xf32>
    %56 = math.log1p %55 : vector<8x32xf32>
    %57 = arith.addf %51, %56 : vector<8x32xf32>
    %cst_26 = arith.constant 0.00999999977 : f32
    %58 = vector.broadcast %cst_26 : f32 to vector<8x32xf32>
    %59 = arith.addf %57, %58 : vector<8x32xf32>
    %60 = tpu.iota {dimensions = array<i32: 1>} : vector<8x32xi32>
    %c16_i32 = arith.constant 16 : i32
    %61 = vector.broadcast %c16_i32 : i32 to vector<8x32xi32>
    %62 = arith.cmpi sge, %60, %61 : vector<8x32xi32>
    %63 = arith.select %62, %59, %49 : vector<8x32xi1>, vector<8x32xf32>
    %c0_27 = arith.constant 0 : index
    %c0_28 = arith.constant 0 : index
    %64 = vector.load %arg5[%c0_27, %c0_28] : memref<8x32xf32, #tpu.memory_space<vmem>>, vector<8x32xf32>
    tpu.vector_store %arg5[%c0_27, %c0_28], %39 {strides = array<i32>} : memref<8x32xf32, #tpu.memory_space<vmem>>, vector<8x32xf32>,
    %65 = tpu.concatenate %63, %39 in 1 : vector<8x32xf32>, vector<8x32xf32> -> vector<8x64xf32>
    %c0_29 = arith.constant 0 : index
    %c0_30 = arith.constant 0 : index
    %c0_31 = arith.constant 0 : index
    %66 = vector.load %arg4[%c0_29, %c0_30, %c0_31] : memref<1x8x64xf32, #tpu.memory_space<vmem>>, vector<1x8x64xf32>
    %67 = vector.shape_cast %66 : vector<1x8x64xf32> to vector<8x64xf32>
    %68 = vector.shape_cast %65 : vector<8x64xf32> to vector<1x8x64xf32>
    tpu.vector_store %arg4[%c0_29, %c0_30, %c0_31], %68 {strides = array<i32>} : memref<1x8x64xf32, #tpu.memory_space<vmem>>, vector<1x8x64xf32>,
    return
  }
  func.func @transform_0(%arg0: i32) -> (i32, i32, i32) {
    %c0_i32 = arith.constant 0 : i32
    %c0_i32_0 = arith.constant 0 : i32
    %c0_i32_1 = arith.constant 0 : i32
    return %arg0, %c0_i32, %c0_i32_0 : i32, i32, i32
  }
  func.func @transform_1(%arg0: i32) -> (i32, i32) {
    %c0_i32 = arith.constant 0 : i32
    %c0_i32_0 = arith.constant 0 : i32
    %c0_i32_1 = arith.constant 0 : i32
    return %c0_i32, %c0_i32_0 : i32, i32
  }
  func.func @transform_2(%arg0: i32) -> (i32, i32) {
    %c0_i32 = arith.constant 0 : i32
    %c0_i32_0 = arith.constant 0 : i32
    %c0_i32_1 = arith.constant 0 : i32
    return %c0_i32, %c0_i32_0 : i32, i32
  }
  func.func @transform_3(%arg0: i32) -> (i32, i32, i32) {
    %c0_i32 = arith.constant 0 : i32
    %c0_i32_0 = arith.constant 0 : i32
    %c0_i32_1 = arith.constant 0 : i32
    return %arg0, %c0_i32, %c0_i32_0 : i32, i32, i32
  }
}

</mosaic_0001>

<bundles_post_ra>
// kernel: tpu_custom_call.1
= control target key start
LH: loop header
LB: loop body
LE: loop exit
PB: predicated region body
PF: predicated region fallthrough
CT: control target
= control target key end

     0   :  { %8 = vsyncpa [#allocation4], 0  ;;  %s1213_s0 = inlined_call_operand.vmem [shape: f32[12,8,24], index: 0, kind: input, shape index: {}]   ;;  %s1214_s1 = inlined_call_operand.vmem [shape: f32[8,32], index: 1, kind: input, shape index: {}]   ;;  %s1215_s2 = inlined_call_operand.vmem [shape: f32[224,96], index: 2, kind: input, shape index: {}]   ;;  %s1216_s3 = inlined_call_operand.hbm [shape: f32[12,8,64], index: 3, kind: output, shape index: {}]  }
   0x1   :  { %10 = vsyncpa [#allocation4 + $0x1], 0  ;;  %s991_s12 = smov 0   ;;  %s993_s13 = smov 0  }
   0x2   :  { %s995_s14 = smov 0   ;;  %s997_s15 = smov 0  }
   0x3 LB: > { %s1012_s16 = sadd.s32 4294967295, %s962_s15   ;;  %s706_s17 = sadd.s32 4294967294, %s962_s15   ;;  %s962_s15 = sphi %s997_s15, %s1222_s15   ;;  %s958_s14 = sphi %s995_s14, %s1221_s14   ;;  %s954_s13 = sphi %s993_s13, %s1220_s13   ;;  %s950_s12 = sphi %s991_s12, %s1219_s12  }
   0x4   : > { %s1016_s18 = sadd.s32 1, %s962_s15   ;;  %s91_s19 = sadd.s32 1, %s958_s14 }
   0x5   : > { %s88_s20 = ssub.s32 %s962_s15, %s1016_s18  ;;  %p101_p0 = scmp.ne.s32.totalorder %s958_s14, %s954_s13 }
   0x6   : > { %p89_p1 = scmp.eq.s32.totalorder %s88_s20, 0  ;;  %p102_p2 = scmp.eq.s32.totalorder %s1012_s16, 11 }
   0x7   : > { %p107_p3 = scmp.ne.s32.totalorder %s954_s13, %s950_s12  ;;  %p108_p4 = scmp.eq.s32.totalorder %s706_s17, 11 }
   0x8   : > { %s1027_s21 = scalar_select %p89_p1, %s958_s14, %s91_s19  }
   0x9   : > { %p1029_p5 = por %p102_p2, %p101_p0  ;;  %p1033_p6 = por %p108_p4, %p107_p3 }
   0xa   : > { %p709_p7 = scmp.ge.s32.totalorder %s962_s15, 1  ;;  %p139_p8 = scmp.lt.s32.totalorder %s962_s15, 13 }
   0xc   : > { %p140_p9 = pnand %p709_p7, %p139_p8 }
   0xd   : > { %s159_s24 = sand.u32 (!%p140_p9), 1, %s954_s13   ;;  %p162_p10 = scmp.lt.s32.totalorder (!%p140_p9), %s1012_s16, 11 }
   0xe   : > { %143 = sbr.rel (%p140_p9) target bundleno = 1342 (0x53e), region = 32  ;;  %s1043_s25 = sshll.u32 (!%p140_p9), %s159_s24, 3 }
   0xf   : > { %s161_s4 = scalar_lea.vmem (!%p140_p9), [#allocation3], %s1043_s25  ;;  %p712_p11 = scmp.ne.s32.totalorder (!%p140_p9), %s1012_s16, 0 }
  0x15   : > { %s163_s26 = scalar_select %p162_p10, %s1012_s16, 11 }
  0x16   : > { %169 = sbr.rel (%p712_p11) target bundleno = 29 (0x1d), region = 36  ;;  %v170_v0 = vld [vmem:[%s1214_s1] sm:$0xff] (!%p712_p11)  ;;  %vm171_vm0 = vcmask (!%p712_p11), 261120  }
  0x17   : > { %s711_s27 = sshll.u32 %s163_s26, 3  ;;  %172 = vst.msk [vmem:[#allocation2] sm:$0xff] (!%p712_p11), %vm171_vm0, %v170_v0 }
  0x18   : > { %s165_s30 = scalar_lea.vmem %s1213_s0, %s711_s27 }
  0x1d PF: > { %v175_v1 = vld [vmem:[%s1215_s2] sm:$0xff]  ;;  %v176_v2 = vld [vmem:[%s1215_s2 + $0x8] sm:$0xff]  ;;  %v964_v3 = vmov 0.0|0.0   ;;  %vm965_vm1 = vmmov 0   ;;  %v966_v5 = vmov 0.0   ;;  %v333_v6 = vld [vmem:[%s1215_s2 + $0x38] sm:$0xff] }
  0x1e   : > { %812 = vmatprep.subr.bf16.mxu1 %v964_v3  ;;  %v813_v4 = vpack.c.bf16 %v176_v2, %v175_v1  ;;  %757 = vmatprep.mubr.msk.f32.mxu1 %vm965_vm1, %v966_v5  ;;  %v334_v7 = vld [vmem:[%s1215_s2 + $0x40] sm:$0xff]  ;;  %v335_v9 = vld [vmem:[%s1215_s2 + $0x48] sm:$0xff]  ;;  %v336_v10 = vld [vmem:[%s1215_s2 + $0x50] sm:$0xff]  ;;  %vm179_vm2 = vcmask 195584   ;;  %vm259_vm3 = vcmask 261120   ;;  %s967_s27 = smov 64  }
  0x1f   : > { %821 = vmatprep.subr.bf16.mxu0 %v964_v3  ;;  %v822_v8 = vpack.c.bf16 %v334_v7, %v333_v6  ;;  %779 = vmatprep.mubr.msk.f32.mxu0 %vm965_vm1, %v966_v5  ;;  %v254_v11 = vld [vmem:[%s1215_s2 + $0x18] sm:$0xff]  ;;  %v255_v12 = vld [vmem:[%s1215_s2 + $0x20] sm:$0xff]  ;;  %v177_v13 = vld [vmem:[%s1215_s2 + $0x10] sm:$0xff]  ;;  %v825_v14 = vpack.c.bf16 %v336_v10, %v335_v9  ;;  %s968_s5 = smov 32   ;;  %s969_s26 = smov 96   ;;  %vm535_vm4 = vcmask 523264  }
  0x20   : > { %814 = vmatpush3.bf16.msra.mxu1 %v813_v4  ;;  %v173_v15 = vld [vmem:[%s165_s30] sm:$0xff]  ;;  %v816_v16 = vpack.c.bf16 %v255_v12, %v254_v11  ;;  %v256_v18 = vld [vmem:[%s1215_s2 + $0x28] sm:$0xff]  ;;  %v257_v19 = vld [vmem:[%s1215_s2 + $0x30] sm:$0xff]  ;;  %s720_s7 = sshll.u32 %s1012_s16, 7  ;;  %s647_s8 = sshll.u32 %s161_s4, 4  ;;  %s1167_s8 = int_to_ptr.vmem [resolvable:$true] %s647_s8 }
  0x21   : > { %755 = vmatprep.subr.mxu1 %v966_v5  ;;  %823 = vmatpush3.bf16.msra.mxu0 %v822_v8  ;;  %v174_v17 = vld [vmem:[#allocation2] sm:$0xff]  ;;  %v819_v20 = vpack.c.bf16 %v257_v19, %v256_v18  ;;  %v417_v21 = vld [vmem:[%s1215_s2 + $0xc8] sm:$0xff]  ;;  %v178_v22 = vld [vmem:[%s1215_s2 + $0xb8] sm:$0xff]  ;;  %s1165_s30 = scalar_lea.hbm %s1216_s3, %s720_s7  ;;  %s634_s16 = scalar_lea.sflag [#allocation4], %s159_s24 }
  0x22   : > { %824 = vmatprep.subr.bf16.mxu0 %v964_v3  ;;  %419 = vrot.lane.b32.xlu0 %v417_v21, %s967_s27  ;;  %v258_v31 = vld [vmem:[%s1215_s2 + $0xc0] sm:$0xff]  ;;  %v445_v44 = vld [vmem:[%s1215_s2 + $0x58] sm:$0xff]  ;;  %v447_v46 = vld [vmem:[%s1215_s2 + $0x68] sm:$0xff]  ;;  %s900_s11 = scalar_lea.vmem %s1167_s8, 128  ;;  %s970_s17 = smov [#allocation3]  }
  0x23   : > { %v446_v45 = vld [vmem:[%s1215_s2 + $0x60] sm:$0xff]  ;;  %v448_v48 = vld [vmem:[%s1215_s2 + $0x70] sm:$0xff]  ;;  %v526_v51 = vld [vmem:[%s1215_s2 + $0x78] sm:$0xff]  ;;  %p901_p12 = scmp.ne.s32.totalorder %s1167_s8, %s900_s11  ;;  %s904_s19 = sshll.u32 %s970_s17, 4  ;;  %s905_s19 = int_to_ptr.vmem [resolvable:$false] %s904_s19 }
  0x24   : > { %756 = vmatpush3.msra.mxu1 %v177_v13  ;;  %v828_v47 = vpack.c.bf16 %v446_v45, %v445_v44  ;;  %v831_v49 = vpack.c.bf16 %v448_v48, %v447_v46  ;;  %v527_v52 = vld [vmem:[%s1215_s2 + $0x80] sm:$0xff]  ;;  %v528_v53 = vld [vmem:[%s1215_s2 + $0x88] sm:$0xff]  ;;  %v529_v55 = vld [vmem:[%s1215_s2 + $0x90] sm:$0xff]  ;;  %s906_s20 = scalar_lea.vmem %s905_s19, 256  ;;  %p907_p1 = scmp.lt.s32.totalorder %s1167_s8, %s905_s19 }
  0x25   : > { %758 = vmatmul.mubr.msk.f32.vlgmr.msra.gmra.mrb[0].mxu1 %vm179_vm2, %v173_v15  ;;  %826 = vmatpush3.bf16.msra.mxu0 %v825_v14  ;;  %v834_v54 = vpack.c.bf16 %v527_v52, %v526_v51  ;;  %v837_v56 = vpack.c.bf16 %v529_v55, %v528_v53  ;;  %v530_v57 = vld [vmem:[%s1215_s2 + $0x98] sm:$0xff]  ;;  %v531_v58 = vld [vmem:[%s1215_s2 + $0xa0] sm:$0xff]  ;;  %v532_v4 = vld [vmem:[%s1215_s2 + $0xa8] sm:$0xff]  ;;  %p902_p13 = pnand %p901_p12, %p1029_p5  ;;  %p908_p2 = scmp.lt.s32.totalorder %s906_s20, %s900_s11 }
  0x26   : > { %815 = vmatprep.subr.bf16.mxu1 %v964_v3  ;;  %768 = vmatprep.mubr.msk.f32.mxu1 %vm965_vm1, %v966_v5  ;;  %v840_v61 = vpack.c.bf16 %v531_v58, %v530_v57  ;;  %v534_v11 = vld [vmem:[%s1215_s2 + $0xd8] sm:$0xff] }
  0x27   : > { %817 = vmatpush3.bf16.msra.mxu1 %v816_v16  ;;  %833 = vmatprep.subr.bf16.mxu0 %v964_v3  ;;  %p903_p0 = pneg %p902_p13  ;;  %p909_p3 = por %p908_p2, %p907_p1 }
  0x28   : > { %780 = vmatmul.mubr.msk.f32.vlgmr.msra.gmra.mrb[0].mxu0 %vm259_vm3, %v174_v17  ;;  %818 = vmatprep.subr.bf16.mxu1 %v964_v3 }
  0x29   : > { %809 = vmatprep.mubr.msk.f32.mxu0 %vm965_vm1, %v966_v5  ;;  %835 = vmatpush3.bf16.msra.mxu0 %v834_v54  ;;  %p910_p4 = pnand %p909_p3, %p903_p0 }
  0x2a   : > { %836 = vmatprep.subr.bf16.mxu0 %v964_v3 }
  0x2b   : > { %820 = vmatpush3.bf16.msra.mxu1 %v819_v20 }
  0x2c   : > { %827 = vmatprep.subr.bf16.mxu1 %v964_v3 }
  0x2d   : > { %838 = vmatpush3.bf16.msra.mxu0 %v837_v56 }
  0x2e   : > { %839 = vmatprep.subr.bf16.mxu0 %v964_v3 }
  0x31   : > { %841 = vmatpush3.bf16.msra.mxu0 %v840_v61 }
  0x32   : > { %842 = vmatprep.subr.bf16.mxu0 %v964_v3 }
  0x94   : > { %v420_v26 = vpop.permute.xlu0 %419 }
  0xf8   : > { %v249_v23 = vpop.f32.mrb[0].mxu1 }
  0xf9   : > { %v250_v24 = vadd.f32 %v249_v23, %v178_v22  ;;  %v759_v25 = vpop.f32.mrb[1].mxu1  ;;  %v625_v22 = vlaneseq }
  0xfb   : > { %v253_v27 = vmax.f32 %v250_v24, 0.0  ;;  %v406_v28 = vpop.f32.mrb[0].mxu0 }
  0xfc   : > { %v422_v29 = vadd.f32 %v420_v26, %v406_v28  ;;  %v781_v30 = vpop.f32.mrb[1].mxu0 }
  0xfd   : > { %769 = vmatmul.mubr.msk.f32.vlgmr.msra.gmra.mrb[2].mxu1 %vm259_vm3, %v253_v27  ;;  %v626_v27 = vand.u32 127, %v625_v22 }
  0xfe   : > { %424 = vrot.lane.b32.xlu0 %v422_v29, %s967_s27  ;;  %790 = vmatprep.mubr.msk.f32.mxu1 %vm965_vm1, %v966_v5  ;;  %v533_v5 = vld [vmem:[%s1215_s2 + $0xb0] sm:$0xff] }
  0xff   : > { %829 = vmatpush3.bf16.msra.mxu1 %v828_v47  ;;  %v843_v6 = vpack.c.bf16 %v533_v5, %v532_v4  ;;  %vm627_vm6 = vcmp.ge.s32.totalorder %v626_v27, 16 }
 0x100   : > { %830 = vmatprep.subr.bf16.mxu1 %v964_v3  ;;  %v449_v3 = vld [vmem:[%s1215_s2 + $0xd0] sm:$0xff] }
 0x101   : > { %844 = vmatpush3.bf16.msra.mxu0 %v843_v6 }
 0x102   : > { %440 = vrot.lane.b32.xlu0 %v174_v17, %s968_s5 }
 0x103   : > { %832 = vmatpush3.bf16.msra.mxu1 %v831_v49 }
 0x170   : > { %v425_v40 = vpop.permute.xlu0 %424 }
 0x174   : > { %v441_v59 = vpop.permute.xlu0 %440 }
 0x1d0   : > { %v329_v32 = vpop.f32.mrb[2].mxu1 }
 0x1d1   : > { %v330_v33 = vadd.f32 %v329_v32, %v258_v31  ;;  %v770_v34 = vpop.f32.mrb[3].mxu1 }
 0x1d3   : > { %v410_v35 = vadd.f32 %v406_v28, %v330_v33 }
 0x1d5   : > { %v716_v36 = vmul.f32 -1.442695, %v410_v35 }
 0x1d7   : > { %890 = vpow2.f32 %v716_v36 }
 0x1e1   : > { %v891_v37 = vpop.eup %890 }
 0x1e2   : > { %v414_v38 = vadd.f32 1.0, %v891_v37 }
 0x1e4   : > { %892 = vrcp.f32 %v414_v38 }
 0x1ee   : > { %v893_v39 = vpop.eup %892 }
 0x1ef   : > { %v427_v41 = vmul.f32 %v893_v39, %v425_v40  ;;  %v434_v60 = vsub.f32 1.0, %v893_v39  ;;  %v443_v63 = vmul.f32 %v893_v39, %v441_v59 }
 0x1f1   : > { %429 = vrot.lane.b32.xlu1 %v427_v41, %s967_s27 }
 0x263   : > { %v430_v42 = vpop.permute.xlu1 %429 }
 0x264   : > { %v432_v43 = vadd.f32 %v430_v42, %v330_v33 }
 0x266   : > { %894 = vtanh.f32 %v432_v43 }
 0x270   : > { %v895_v50 = vpop.eup %894 }
 0x271   : > { %436 = vrot.lane.b32.xlu1 %v895_v50, %s969_s26 }
 0x2e3   : > { %v437_v62 = vpop.permute.xlu1 %436 }
 0x2e4   : > { %v439_v0 = vmul.f32 %v437_v62, %v434_v60 }
 0x2e6   : > { %v444_v1 = vadd.f32 %v443_v63, %v439_v0 }
 0x2e8   : > { %451 = vrot.lane.b32.xlu1 %v444_v1, %s969_s26 }
 0x35a   : > { %v452_v2 = vpop.permute.xlu1 %451 }
 0x35b   : > { %630 = vst.msk [vmem:[#allocation2] sm:$0xff] %vm259_vm3, %v452_v2  ;;  %791 = vmatmul.mubr.msk.f32.vlgmr.msra.gmra.mrb[4].mxu1 %vm259_vm3, %v452_v2 }
 0x42e   : > { %v521_v7 = vpop.f32.mrb[4].mxu1 }
 0x42f   : > { %v522_v8 = vadd.f32 %v521_v7, %v449_v3  ;;  %v792_v9 = vpop.f32.mrb[5].mxu1 }
 0x431   : > { %v525_v10 = vmax.f32 %v522_v8, 0.0 }
 0x433   : > { %810 = vmatmul.mubr.msk.f32.vlgmr.msra.gmra.mrb[2].mxu0 %vm535_vm4, %v525_v10 }
 0x506   : > { %v605_v12 = vpop.f32.mrb[2].mxu0 }
 0x507   : > { %v606_v13 = vadd.f32 %v605_v12, %v534_v11  ;;  %v811_v14 = vpop.f32.mrb[3].mxu0 }
 0x509   : > { %v610_v15 = vand.u32 2147483647, %v606_v13  ;;  %v609_v28 = vmax.f32 %v606_v13, 0.0 }
 0x50b   : > { %v611_v16 = vsub.f32 0.0, %v610_v15 }
 0x50d   : > { %v612_v17 = vmul.f32 1.442695, %v611_v16 }
 0x50f   : > { %896 = vpow2.f32 %v612_v17 }
 0x519   : > { %v897_v18 = vpop.eup %896 }
 0x51a   : > { %v614_v19 = vadd.f32 1.0, %v897_v18  ;;  %v617_v20 = vmul.f32 -0.5, %v897_v18  ;;  %v620_v23 = vand.u32 2147483647, %v897_v18 }
 0x51c   : > { %898 = vlog2.f32 %v614_v19  ;;  %v618_v21 = vadd.f32 1.0, %v617_v20  ;;  %vm621_vm5 = vcmp.lt.f32.partialorder %v620_v23, 0.0004427343 }
 0x51e   : > { %v619_v26 = vmul.f32 %v897_v18, %v618_v21 }
 0x526   : > { %v899_v24 = vpop.eup %898 }
 0x527   : > { %v616_v25 = vmul.f32 0.6931472, %v899_v24 }
 0x529   : > { %v622_v29 = vsel %vm621_vm5, %v619_v26, %v616_v25 }
 0x52a   : > { %v623_v30 = vadd.f32 %v622_v29, %v609_v28 }
 0x52c   : > { %v624_v31 = vadd.f32 0.01, %v623_v30 }
 0x52e   : > { %v628_v32 = vsel %vm627_vm6, %v624_v31, %v606_v13 }
 0x52f   : > { %v631_v33 = vsel %vm259_vm3, %v628_v32, %v444_v1 }
 0x530   : > { %632 = vst.msk [vmem:[%s161_s4] sm:$0xff] %vm535_vm4, %v631_v33 }
 0x531   : > { %913 = shalt.err (!%p910_p4)
}
 0x532   : > { %s914_s24 = scalar_lea.hbm %s1165_s30, 128  ;;  %s918_s27 = scalar_lea.hbm %s1216_s3, 1536 }
 0x533   : > { %p915_p7 = scmp.ne.s32.totalorder %s1165_s30, %s914_s24  ;;  %p919_p10 = scmp.lt.u32.totalorder %s1165_s30, %s1216_s3 }
 0x534   : > { %p920_p11 = scmp.lt.u32.totalorder %s918_s27, %s914_s24  ;;  %p922_p13 = scmp.lt.u32.totalorder %s914_s24, %s1165_s30 }
 0x535   : > { %p916_p8 = pnand %p915_p7, %p1029_p5 }
 0x536   : > { %p921_p12 = por %p920_p11, %p919_p10 }
 0x537   : > { %p917_p9 = pneg %p916_p8 }
 0x538   : > { %p923_p0 = por %p922_p13, %p921_p12 }
 0x53a   : > { %p924_p1 = pnand %p923_p0, %p917_p9 }
 0x53c   : > { %927 = shalt.err (!%p924_p1)
}
 0x53d   : > { %845 = dma.vmem_to_hbm [thread:$0]  (%p1029_p5), %s1167_s8, 128, %s1165_s30, %s634_s16  }
 0x53e PF: > { %p851_p2 = scmp.ge.s32.totalorder %s962_s15, 2  ;;  %s659_s5 = sand.u32 1, %s950_s12  }
 0x53f   : > { %s660_s26 = scalar_lea.sflag [#allocation4], %s659_s5 }
 0x540   : > { %p848_p3 = pnand %p851_p2, %p1033_p6 }
 0x542   : > { %945 = dma.done.wait (!%p848_p3), %s660_s26, 128  }
 0x543   : > { %947 = vsyncadd (!%p848_p3), %s660_s26, 4294967168  ;;  %p13_p4 = scmp.ge.s32.totalorder %s1016_s18, 14   ;;  %s1219_s12 = smov %s954_s13 }
 0x544   : > { %s1220_s13 = smov %s958_s14  ;;  %s1221_s14 = smov %s1027_s21 }
 0x545   : > { %s1222_s15 = smov %s1016_s18  ;;  %15 = sbr.rel (!%p13_p4) target bundleno = 3 (0x3), region = 71 }
 0x54c   :  { %665 = vsyncpa [#allocation4], 1 }
 0x54d   :  { %667 = vsyncpa [#allocation4 + $0x1], 1 }

</bundles_post_ra>
